<compile_context>
chip_gen: v6e
topology: v6e:2x2x1
jax: 0.10.0
libtpu: 0.0.40
codegen_flags: <defaults>
</compile_context>

<pallas_src>
import functools

import jax
import jax.numpy as jnp
from jax import lax
from jax.experimental import pallas as pl
from jax.experimental.pallas import tpu as pltpu

_EPS = 1e-12     # eps of torch.nn.functional.normalize
_LANE = 128


def _round_up(x, m):
    return ((x + m - 1) // m) * m


def _vmem_capacity_bytes():
    """Physical per-core VMEM (128 MiB on v5e/v6e, 64 MiB on v7x)."""
    try:
        get_info = getattr(pltpu, "get_tpu_info", None)
        if get_info is not None:
            info = get_info()
            for name in ("vmem_capacity_bytes", "vmem_size_bytes", "vmem_bytes"):
                v = getattr(info, name, None)
                if v:
                    return int(v)
    except Exception:
        pass
    return 128 << 20


def _make_spkd_kernel(batch, reduction, precision):
    """batch is the ORIGINAL (unpadded) batch size; reduction/precision static."""

    def kernel(zt_ref, zs_ref, o_ref, gt_acc, gs_acc):
        k = pl.program_id(0)

        @pl.when(k == 0)
        def _():
            gt_acc[...] = jnp.zeros_like(gt_acc)
            gs_acc[...] = jnp.zeros_like(gs_acc)

        zt = zt_ref[...]                       # (B_pad, TK_t), native dtype
        zs = zs_ref[...]                       # (B_pad, TK_s), native dtype
        dn = (((1,), (1,)), ((), ()))          # contract feature axis: Z @ Z.T
        gt_acc[...] += lax.dot_general(zt, zt, dn, precision=precision,
                                       preferred_element_type=jnp.float32)
        gs_acc[...] += lax.dot_general(zs, zs, dn, precision=precision,
                                       preferred_element_type=jnp.float32)

        @pl.when(k == pl.num_programs(0) - 1)
        def _():
            gt = gt_acc[...]                   # (B_pad, B_pad) f32
            gs = gs_acc[...]
            # F.normalize(g, p=1, dim=1, eps=1e-12): divide each row by its
            # clamped L1 norm.  Padded (all-zero) rows normalize to zero.
            inv_t = pl.reciprocal(
                jnp.maximum(jnp.sum(jnp.abs(gt), axis=1, keepdims=True), _EPS),
                approx=True)
            inv_s = pl.reciprocal(
                jnp.maximum(jnp.sum(jnp.abs(gs), axis=1, keepdims=True), _EPS),
                approx=True)
            diff = gt * inv_t - gs * inv_s
            loss = jnp.sum(jnp.sum(diff * diff, axis=1, keepdims=True),
                           axis=0, keepdims=True)          # (1, 1)
            if reduction == 'batchmean':
                loss = loss / float(batch * batch)
            o_ref[...] = loss

    return kernel


def _spkd_loss_xla(zt, zs, batch, reduction):
    """Plain-XLA fallback for batches whose Gram accumulators exceed VMEM."""
    hp = lax.Precision.HIGHEST
    zt = zt.astype(jnp.float32)
    zs = zs.astype(jnp.float32)
    gt = jnp.dot(zt, zt.T, precision=hp)
    gs = jnp.dot(zs, zs.T, precision=hp)

    def l1n(g):
        return g / jnp.maximum(jnp.sum(jnp.abs(g), axis=1, keepdims=True), _EPS)

    d = l1n(gt) - l1n(gs)
    loss = jnp.sum(d * d)
    return loss / float(batch * batch) if reduction == 'batchmean' else loss


@functools.partial(jax.jit, static_argnames=('reduction',))
def spkd_loss(student_outputs, teacher_outputs, reduction='batchmean'):
    """SPKDLoss.forward equivalent (returns a scalar float32 loss)."""
    B = teacher_outputs.shape[0]
    assert student_outputs.shape[0] == B, "batch sizes must match"
    zt = teacher_outputs.reshape(B, -1)
    zs = student_outputs.reshape(B, -1)

    dtype = jnp.promote_types(zt.dtype, zs.dtype)
    zt = zt.astype(dtype)
    zs = zs.astype(dtype)
    itemsize = jnp.dtype(dtype).itemsize

    # Pad batch axis to a full sublane multiple (8 for f32, 16 for 16-bit).
    sub = max(8, 32 // max(itemsize, 1))
    b_pad = _round_up(B, sub)

    vmem_cap = _vmem_capacity_bytes()
    acc_bytes = 2 * b_pad * b_pad * 4            # two f32 (b_pad, b_pad) accumulators
    headroom = 8 << 20
    row_chunk_bytes = b_pad * _LANE * itemsize   # one 128-lane column chunk per input

    # Scalability guard: untiled Gram accumulators + at least one double-buffered
    # 128-lane block per input must fit the physical VMEM of this generation.
    if acc_bytes + 4 * row_chunk_bytes + headroom > vmem_cap:
        # TODO(synk): tile the Gram accumulators over (row, col) blocks for very
        # large batches instead of falling back to plain XLA.
        return _spkd_loss_xla(zt, zs, B, reduction)

    # Generation-aware per-input block budget (~4 MiB on 128 MiB VMEM parts,
    # ~2 MiB on v7x's 64 MiB), after reserving accumulators + headroom.
    # 4 = 2 inputs x 2 pipeline buffers.
    target_block = (2 << 20) if vmem_cap <= (64 << 20) else (4 << 20)
    avail_for_blocks = vmem_cap - acc_bytes - headroom
    per_block = max(min(target_block, avail_for_blocks // 4), row_chunk_bytes)

    # Independent block widths for teacher/student (shared grid length) so the
    # smaller tensor never streams zeros up to max(Dt, Ds).  For realistic B
    # this yields TK well above 512-1024 lanes (long contiguous HBM segments,
    # few accumulator read-modify-write steps).
    chunks_t = pl.cdiv(zt.shape[1], _LANE)
    chunks_s = pl.cdiv(zs.shape[1], _LANE)
    max_chunks = max(1, per_block // row_chunk_bytes)
    num_k = pl.cdiv(max(chunks_t, chunks_s), max_chunks)
    tk_t = pl.cdiv(chunks_t, num_k) * _LANE
    tk_s = pl.cdiv(chunks_s, num_k) * _LANE
    d_pad_t = num_k * tk_t
    d_pad_s = num_k * tk_s

    def maybe_pad(z, d_pad):
        pr, pc = b_pad - z.shape[0], d_pad - z.shape[1]
        if pr == 0 and pc == 0:
            return z                      # skip the HBM round-trip when aligned
        return jnp.pad(z, ((0, pr), (0, pc)))

    zt_p = maybe_pad(zt, d_pad_t)
    zs_p = maybe_pad(zs, d_pad_s)

    # Scoped-VMEM plan: 2 pipeline buffers per input + accumulators + headroom.
    need = 2 * (tk_t + tk_s) * b_pad * itemsize + acc_bytes + (4 << 20)
    vmem_limit = int(min(max(need, 32 << 20), vmem_cap - (4 << 20)))

    precision = (lax.Precision.HIGHEST if dtype == jnp.float32
                 else lax.Precision.DEFAULT)
    kernel = _make_spkd_kernel(B, reduction, precision)

    out = pl.pallas_call(
        kernel,
        out_shape=jax.ShapeDtypeStruct((1, 1), jnp.float32),
        grid_spec=pltpu.PrefetchScalarGridSpec(
            num_scalar_prefetch=0,
            grid=(num_k,),
            in_specs=[
                pl.BlockSpec((b_pad, tk_t), lambda k: (0, k)),
                pl.BlockSpec((b_pad, tk_s), lambda k: (0, k)),
            ],
            out_specs=pl.BlockSpec((1, 1), lambda k: (0, 0)),
            scratch_shapes=[
                pltpu.VMEM((b_pad, b_pad), jnp.float32),
                pltpu.VMEM((b_pad, b_pad), jnp.float32),
            ],
        ),
        compiler_params=pltpu.CompilerParams(
            dimension_semantics=("arbitrary",),
            vmem_limit_bytes=vmem_limit,
        ),
    )(zt_p, zs_p)
    return out[0, 0]


def _reference(teacher_outputs, student_outputs, reduction='batchmean'):
    """Pure-JAX reference mirroring the PyTorch forward."""
    B = teacher_outputs.shape[0]
    hp = lax.Precision.HIGHEST
    zt = teacher_outputs.reshape(B, -1).astype(jnp.float32)
    zs = student_outputs.reshape(B, -1).astype(jnp.float32)
    gt = jnp.dot(zt, zt.T, precision=hp)
    gs = jnp.dot(zs, zs.T, precision=hp)

    def l1_normalize(g):
        n = jnp.sum(jnp.abs(g), axis=1, keepdims=True)
        return g / jnp.maximum(n, _EPS)

    d = l1_normalize(gt) - l1_normalize(gs)
    loss = jnp.sum(d * d)
    return loss / float(B * B) if reduction == 'batchmean' else loss


if __name__ == "__main__":
    key = jax.random.PRNGKey(0)
    k_t, k_s = jax.random.split(key)

    # Small NCHW feature maps (e.g. 'layer4'-style activations):
    # batch=2, channels=4, spatial=16x16 -> flattened D = 1024.
    teacher_outputs = jax.random.normal(k_t, (2, 4, 16, 16), jnp.float32)
    student_outputs = jax.random.normal(k_s, (2, 4, 16, 16), jnp.float32)

    loss = spkd_loss(student_outputs, teacher_outputs, reduction='batchmean')
    loss = jax.block_until_ready(loss)

    ref = _reference(teacher_outputs, student_outputs, reduction='batchmean')
    assert jnp.isfinite(loss), "loss is not finite"
    # f32 inputs use HIGHEST-precision MXU passes; the approx reciprocal in the
    # epilogue leaves only a small residual error, so a modest tolerance is safe.
    assert jnp.allclose(loss, ref, rtol=2e-2, atol=1e-7), (loss, ref)

    print("KERNEL_OK")
</pallas_src>

<mosaic_0001>
module attributes {stable_mosaic.version = 11 : i64} {
  func.func @kernel(%arg0: i32, %arg1: memref<8x1024xf32, #tpu.memory_space<vmem>>, %arg2: memref<8x1024xf32, #tpu.memory_space<vmem>>, %arg3: memref<1x1xf32, #tpu.memory_space<vmem>>, %arg4: memref<8x8xf32, #tpu.memory_space<vmem>>, %arg5: memref<8x8xf32, #tpu.memory_space<vmem>>) attributes {dimension_semantics = [#tpu.dimension_semantics<arbitrary>], iteration_bounds = array<i64: 1>, scalar_prefetch = 0 : i64, scratch_operands = 2 : i64, tpu.core_type = #tpu.core_type<tc>, window_params = [{transform_indices = @transform_0, window_bounds = array<i64: 8, 1024>}, {transform_indices = @transform_1, window_bounds = array<i64: 8, 1024>}, {pipeline_mode = #tpu.pipeline_mode<synchronous>, transform_indices = @transform_2, window_bounds = array<i64: 1, 1>}]} {
    %c0_i32 = arith.constant 0 : i32
    %0 = arith.cmpi eq, %arg0, %c0_i32 : i32
    %1 = arith.extui %0 : i1 to i32
    %c0_i32_0 = arith.constant 0 : i32
    %2 = arith.cmpi ne, %1, %c0_i32_0 : i32
    scf.if %2 {
      %cst_15 = arith.constant 0.000000e+00 : f32
      %16 = vector.broadcast %cst_15 : f32 to vector<8x8xf32>
      %c0_16 = arith.constant 0 : index
      %c0_17 = arith.constant 0 : index
      %17 = vector.load %arg4[%c0_16, %c0_17] : memref<8x8xf32, #tpu.memory_space<vmem>>, vector<8x8xf32>
      tpu.vector_store %arg4[%c0_16, %c0_17], %16 {strides = array<i32>} : memref<8x8xf32, #tpu.memory_space<vmem>>, vector<8x8xf32>,
      %cst_18 = arith.constant 0.000000e+00 : f32
      %18 = vector.broadcast %cst_18 : f32 to vector<8x8xf32>
      %c0_19 = arith.constant 0 : index
      %c0_20 = arith.constant 0 : index
      %19 = vector.load %arg5[%c0_19, %c0_20] : memref<8x8xf32, #tpu.memory_space<vmem>>, vector<8x8xf32>
      tpu.vector_store %arg5[%c0_19, %c0_20], %18 {strides = array<i32>} : memref<8x8xf32, #tpu.memory_space<vmem>>, vector<8x8xf32>,
    } else {
    }
    %c0 = arith.constant 0 : index
    %c0_1 = arith.constant 0 : index
    %3 = vector.load %arg1[%c0, %c0_1] : memref<8x1024xf32, #tpu.memory_space<vmem>>, vector<8x1024xf32>
    %c0_2 = arith.constant 0 : index
    %c0_3 = arith.constant 0 : index
    %4 = vector.load %arg2[%c0_2, %c0_3] : memref<8x1024xf32, #tpu.memory_space<vmem>>, vector<8x1024xf32>
    %c0_4 = arith.constant 0 : index
    %c0_5 = arith.constant 0 : index
    %5 = vector.load %arg4[%c0_4, %c0_5] : memref<8x8xf32, #tpu.memory_space<vmem>>, vector<8x8xf32>
    %cst = arith.constant dense<0.000000e+00> : vector<8x8xf32>
    %6 = tpu.matmul %3, %3, %cst {dimension_numbers = #tpu.dot_dimension_numbers<[1], [1], [0], [0], [0, 0, 1, 0], [], []>, precision = #tpu.contract_precision<fp32>} : vector<8x1024xf32>, vector<8x1024xf32>, vector<8x8xf32> -> vector<8x8xf32>
    %7 = arith.addf %5, %6 : vector<8x8xf32>
    %c0_6 = arith.constant 0 : index
    %c0_7 = arith.constant 0 : index
    %8 = vector.load %arg4[%c0_6, %c0_7] : memref<8x8xf32, #tpu.memory_space<vmem>>, vector<8x8xf32>
    tpu.vector_store %arg4[%c0_6, %c0_7], %7 {strides = array<i32>} : memref<8x8xf32, #tpu.memory_space<vmem>>, vector<8x8xf32>,
    %c0_8 = arith.constant 0 : index
    %c0_9 = arith.constant 0 : index
    %9 = vector.load %arg5[%c0_8, %c0_9] : memref<8x8xf32, #tpu.memory_space<vmem>>, vector<8x8xf32>
    %cst_10 = arith.constant dense<0.000000e+00> : vector<8x8xf32>
    %10 = tpu.matmul %4, %4, %cst_10 {dimension_numbers = #tpu.dot_dimension_numbers<[1], [1], [0], [0], [0, 0, 1, 0], [], []>, precision = #tpu.contract_precision<fp32>} : vector<8x1024xf32>, vector<8x1024xf32>, vector<8x8xf32> -> vector<8x8xf32>
    %11 = arith.addf %9, %10 : vector<8x8xf32>
    %c0_11 = arith.constant 0 : index
    %c0_12 = arith.constant 0 : index
    %12 = vector.load %arg5[%c0_11, %c0_12] : memref<8x8xf32, #tpu.memory_space<vmem>>, vector<8x8xf32>
    tpu.vector_store %arg5[%c0_11, %c0_12], %11 {strides = array<i32>} : memref<8x8xf32, #tpu.memory_space<vmem>>, vector<8x8xf32>,
    %c0_i32_13 = arith.constant 0 : i32
    %13 = arith.cmpi eq, %arg0, %c0_i32_13 : i32
    %14 = arith.extui %13 : i1 to i32
    %c0_i32_14 = arith.constant 0 : i32
    %15 = arith.cmpi ne, %14, %c0_i32_14 : i32
    scf.if %15 {
      %c0_15 = arith.constant 0 : index
      %c0_16 = arith.constant 0 : index
      %16 = vector.load %arg4[%c0_15, %c0_16] : memref<8x8xf32, #tpu.memory_space<vmem>>, vector<8x8xf32>
      %c0_17 = arith.constant 0 : index
      %c0_18 = arith.constant 0 : index
      %17 = vector.load %arg5[%c0_17, %c0_18] : memref<8x8xf32, #tpu.memory_space<vmem>>, vector<8x8xf32>
      %18 = math.absf %16 : vector<8x8xf32>
      %cst_19 = arith.constant dense<0.000000e+00> : vector<8xf32>
      %19 = vector.multi_reduction <add>, %18, %cst_19 [1] : vector<8x8xf32> to vector<8xf32>
      %20 = vector.shape_cast %19 : vector<8xf32> to vector<8x1xf32>
      %cst_20 = arith.constant 9.99999996E-13 : f32
      %21 = vector.broadcast %cst_20 : f32 to vector<8x1xf32>
      %22 = arith.maximumf %20, %21 : vector<8x1xf32>
      %23 = tpu.reciprocal %22 {approx = true} : vector<8x1xf32> -> vector<8x1xf32>
      %24 = math.absf %17 : vector<8x8xf32>
      %cst_21 = arith.constant dense<0.000000e+00> : vector<8xf32>
      %25 = vector.multi_reduction <add>, %24, %cst_21 [1] : vector<8x8xf32> to vector<8xf32>
      %26 = vector.shape_cast %25 : vector<8xf32> to vector<8x1xf32>
      %cst_22 = arith.constant 9.99999996E-13 : f32
      %27 = vector.broadcast %cst_22 : f32 to vector<8x1xf32>
      %28 = arith.maximumf %26, %27 : vector<8x1xf32>
      %29 = tpu.reciprocal %28 {approx = true} : vector<8x1xf32> -> vector<8x1xf32>
      %30 = vector.broadcast %23 : vector<8x1xf32> to vector<8x8xf32>
      %31 = arith.mulf %16, %30 : vector<8x8xf32>
      %32 = vector.broadcast %29 : vector<8x1xf32> to vector<8x8xf32>
      %33 = arith.mulf %17, %32 : vector<8x8xf32>
      %34 = arith.subf %31, %33 : vector<8x8xf32>
      %35 = arith.mulf %34, %34 : vector<8x8xf32>
      %cst_23 = arith.constant dense<0.000000e+00> : vector<8xf32>
      %36 = vector.multi_reduction <add>, %35, %cst_23 [1] : vector<8x8xf32> to vector<8xf32>
      %37 = vector.shape_cast %36 : vector<8xf32> to vector<8x1xf32>
      %cst_24 = arith.constant dense<0.000000e+00> : vector<1xf32>
      %38 = vector.multi_reduction <add>, %37, %cst_24 [0] : vector<8x1xf32> to vector<1xf32>
      %39 = vector.shape_cast %38 : vector<1xf32> to vector<1x1xf32>
      %cst_25 = arith.constant 4.000000e+00 : f32
      %40 = vector.broadcast %cst_25 : f32 to vector<1x1xf32>
      %41 = arith.divf %39, %40 : vector<1x1xf32>
      %c0_26 = arith.constant 0 : index
      %c0_27 = arith.constant 0 : index
      %42 = vector.load %arg3[%c0_26, %c0_27] : memref<1x1xf32, #tpu.memory_space<vmem>>, vector<1x1xf32>
      tpu.vector_store %arg3[%c0_26, %c0_27], %41 {strides = array<i32>} : memref<1x1xf32, #tpu.memory_space<vmem>>, vector<1x1xf32>,
    } else {
    }
    return
  }
  func.func @transform_0(%arg0: i32) -> (i32, i32) {
    %c0_i32 = arith.constant 0 : i32
    %c0_i32_0 = arith.constant 0 : i32
    return %c0_i32, %arg0 : i32, i32
  }
  func.func @transform_1(%arg0: i32) -> (i32, i32) {
    %c0_i32 = arith.constant 0 : i32
    %c0_i32_0 = arith.constant 0 : i32
    return %c0_i32, %arg0 : i32, i32
  }
  func.func @transform_2(%arg0: i32) -> (i32, i32) {
    %c0_i32 = arith.constant 0 : i32
    %c0_i32_0 = arith.constant 0 : i32
    %c0_i32_1 = arith.constant 0 : i32
    return %c0_i32, %c0_i32_0 : i32, i32
  }
}

</mosaic_0001>

<bundles_post_ra>
// kernel: spkd_loss.1
= control target key start
LH: loop header
LB: loop body
LE: loop exit
PB: predicated region body
PF: predicated region fallthrough
CT: control target
= control target key end

     0   :  { %s4099_s0 = inlined_call_operand.vmem [shape: f32[8,1024], index: 0, kind: input, shape index: {}]   ;;  %s4100_s1 = inlined_call_operand.vmem [shape: f32[8,1024], index: 1, kind: input, shape index: {}]   ;;  %s4101_s2 = inlined_call_operand.hbm [shape: f32[1,1], index: 2, kind: output, shape index: {}]  }
   0x1   :  { %v20_v0 = vld [vmem:[%s4099_s0 + $0x8] sm:$0xff]  ;;  %v19_v1 = vld [vmem:[%s4099_s0] sm:$0xff]  ;;  %v22_v2 = vld [vmem:[%s4099_s0 + $0x18] sm:$0xff] }
   0x2   :  { %v66_v3 = vand.u32 4294901760, %v20_v0  ;;  %v68_v4 = vand.u32 4294901760, %v19_v1  ;;  %v21_v5 = vld [vmem:[%s4099_s0 + $0x10] sm:$0xff]  ;;  %v3923_v6 = vand.u32 4294901760, %v22_v2 }
   0x3   :  { %v3925_v9 = vand.u32 4294901760, %v21_v5 }
   0x4   :  { %67 = vmatprep.subr.mxu0 %v66_v3  ;;  %v103_v7 = vsub.f32 %v20_v0, %v66_v3  ;;  %v109_v8 = vsub.f32 %v19_v1, %v68_v4  ;;  %193 = vmatprep.mubr.f32.mxu1 %v66_v3 }
   0x5   :  { %69 = vmatpush1.xpose.msra.mxu0 %v68_v4 }
   0x6   :  { %v104_v10 = vand.u32 4294901760, %v103_v7  ;;  %v110_v11 = vand.u32 4294901760, %v109_v8  ;;  %232 = vmatprep.subr.mxu0 %v103_v7 }
   0x7   :  { %7 = vsyncpa [#allocation5], 0  ;;  %v575_v12 = vsub.f32 %v22_v2, %v3923_v6  ;;  %v581_v15 = vsub.f32 %v21_v5, %v3925_v9  ;;  %v24_v19 = vld [vmem:[%s4099_s0 + $0x28] sm:$0xff]  ;;  %v23_v21 = vld [vmem:[%s4099_s0 + $0x20] sm:$0xff]  ;;  %vm16_vm0 = vcmask 64512   ;;  %vm3850_vm1 = vcmask 0  }
   0x8   :  { %v105_v13 = vsub.f32 %v103_v7, %v104_v10  ;;  %v111_v14 = vsub.f32 %v109_v8, %v110_v11  ;;  %v3935_v23 = vand.u32 4294901760, %v24_v19  ;;  %v3937_v25 = vand.u32 4294901760, %v23_v21  ;;  %v26_v31 = vld [vmem:[%s4099_s0 + $0x38] sm:$0xff]  ;;  %v25_v33 = vld [vmem:[%s4099_s0 + $0x30] sm:$0xff]  ;;  %v28_v43 = vld [vmem:[%s4100_s1 + $0x8] sm:$0xff] }
   0x9   :  { %v576_v18 = vand.u32 4294901760, %v575_v12  ;;  %v582_v20 = vand.u32 4294901760, %v581_v15  ;;  %v3951_v35 = vand.u32 4294901760, %v26_v31  ;;  %v3955_v37 = vand.u32 4294901760, %v25_v33  ;;  %v27_v45 = vld [vmem:[%s4100_s1] sm:$0xff]  ;;  %v30_v55 = vld [vmem:[%s4100_s1 + $0x18] sm:$0xff] }
   0xa   :  { %v106_v16 = vand.u32 4294901760, %v105_v13  ;;  %v112_v17 = vand.u32 4294901760, %v111_v14  ;;  %v1047_v27 = vsub.f32 %v24_v19, %v3935_v23  ;;  %v1053_v29 = vsub.f32 %v23_v21, %v3937_v25  ;;  %v29_v57 = vld [vmem:[%s4100_s1 + $0x10] sm:$0xff]  ;;  %v31_v5 = vld [vmem:[%s4100_s1 + $0x20] sm:$0xff] }
   0xb   :  { %v577_v22 = vsub.f32 %v575_v12, %v576_v18  ;;  %v583_v24 = vsub.f32 %v581_v15, %v582_v20  ;;  %v1519_v39 = vsub.f32 %v26_v31, %v3951_v35  ;;  %v1525_v41 = vsub.f32 %v25_v33, %v3955_v37 }
   0xc   :  { %107 = vmatprep.mubr.f32.mxu0 %v106_v16  ;;  %153 = vmatprep.subr.mxu1 %v106_v16  ;;  %v1048_v30 = vand.u32 4294901760, %v1047_v27  ;;  %v1054_v32 = vand.u32 4294901760, %v1053_v29  ;;  %v3975_v47 = vand.u32 4294901760, %v28_v43  ;;  %v3979_v49 = vand.u32 4294901760, %v27_v45 }
   0xd   :  { %113 = vmatmul.mubr.f32.vlgmr.msra.gmra.mxu0 %v112_v17  ;;  %159 = vmatpush1.xpose.msra.mxu1 %v112_v17  ;;  %v578_v26 = vand.u32 4294901760, %v577_v22  ;;  %v584_v28 = vand.u32 4294901760, %v583_v24  ;;  %v1520_v42 = vand.u32 4294901760, %v1519_v39  ;;  %v1526_v44 = vand.u32 4294901760, %v1525_v41  ;;  %v33_v17 = vld [vmem:[%s4100_s1 + $0x30] sm:$0xff] }
   0xe   :  { %235 = vmatpush1.xpose.msra.mxu0 %v109_v8  ;;  %270 = vmatprep.mubr.f32.mxu0 %v103_v7  ;;  %v1049_v34 = vsub.f32 %v1047_v27, %v1048_v30  ;;  %v1055_v36 = vsub.f32 %v1053_v29, %v1054_v32  ;;  %v1995_v51 = vsub.f32 %v28_v43, %v3975_v47  ;;  %v3999_v59 = vand.u32 4294901760, %v30_v55 }
   0xf   :  { %309 = vmatprep.subr.mxu1 %v66_v3  ;;  %389 = vmatprep.subr.mxu0 %v104_v10  ;;  %v1521_v46 = vsub.f32 %v1519_v39, %v1520_v42  ;;  %v1527_v48 = vsub.f32 %v1525_v41, %v1526_v44  ;;  %v2001_v53 = vsub.f32 %v27_v45, %v3979_v49  ;;  %v4003_v61 = vand.u32 4294901760, %v29_v57 }
  0x10   :  { %195 = vmatmul.mubr.f32.vlgmr.msra.gmra.mxu1 %v68_v4  ;;  %v1050_v38 = vand.u32 4294901760, %v1049_v34  ;;  %v1056_v40 = vand.u32 4294901760, %v1055_v36  ;;  %v1996_v54 = vand.u32 4294901760, %v1995_v51  ;;  %v2467_v63 = vsub.f32 %v30_v55, %v3999_v59 }
  0x11   :  { %273 = vmatmul.mubr.f32.vlgmr.msra.gmra.mxu0 %v109_v8  ;;  %311 = vmatpush1.xpose.msra.mxu1 %v68_v4  ;;  %v1522_v50 = vand.u32 4294901760, %v1521_v46  ;;  %v1528_v52 = vand.u32 4294901760, %v1527_v48  ;;  %v2002_v56 = vand.u32 4294901760, %v2001_v53  ;;  %v2473_v1 = vsub.f32 %v29_v57, %v4003_v61 }
  0x12   :  { %393 = vmatpush1.xpose.msra.mxu0 %v110_v11  ;;  %347 = vmatprep.mubr.f32.mxu1 %v104_v10  ;;  %v1997_v58 = vsub.f32 %v1995_v51, %v1996_v54  ;;  %v2468_v2 = vand.u32 4294901760, %v2467_v63  ;;  %v4051_v21 = vand.u32 4294901760, %v33_v17 }
  0x13   :  { %427 = vmatprep.mubr.f32.mxu0 %v66_v3  ;;  %465 = vmatprep.subr.mxu1 %v66_v3  ;;  %v2003_v60 = vsub.f32 %v2001_v53, %v2002_v56 }
  0x14   :  { %351 = vmatmul.mubr.f32.vlgmr.msra.gmra.mxu1 %v110_v11  ;;  %539 = vmatprep.subr.mxu0 %v3923_v6  ;;  %v1998_v62 = vand.u32 4294901760, %v1997_v58 }
  0x15   :  { %429 = vmatmul.mubr.f32.vlgmr.msra.gmra.mxu0 %v68_v4  ;;  %467 = vmatpush1.xpose.msra.mxu1 %v68_v4  ;;  %v2004_v0 = vand.u32 4294901760, %v2003_v60 }
  0x16   :  { %541 = vmatpush1.xpose.msra.mxu0 %v3925_v9  ;;  %501 = vmatprep.mubr.f32.mxu1 %v66_v3  ;;  %v32_v3 = vld [vmem:[%s4100_s1 + $0x28] sm:$0xff] }
  0x17   :  { %579 = vmatprep.mubr.f32.mxu0 %v578_v26  ;;  %625 = vmatprep.subr.mxu1 %v578_v26  ;;  %v4023_v7 = vand.u32 4294901760, %v32_v3 }
  0x18   :  { %503 = vmatmul.mubr.f32.vlgmr.msra.gmra.mxu1 %v68_v4  ;;  %704 = vmatprep.subr.mxu0 %v575_v12  ;;  %v2474_v4 = vand.u32 4294901760, %v2473_v1 }
  0x19   :  { %585 = vmatmul.mubr.f32.vlgmr.msra.gmra.mxu0 %v584_v28  ;;  %631 = vmatpush1.xpose.msra.mxu1 %v584_v28  ;;  %v2939_v11 = vsub.f32 %v32_v3, %v4023_v7 }
  0x1a   :  { %707 = vmatpush1.xpose.msra.mxu0 %v581_v15  ;;  %665 = vmatprep.mubr.f32.mxu1 %v3923_v6  ;;  %v2475_v8 = vsub.f32 %v2473_v1, %v2474_v4 }
  0x1b   :  { %742 = vmatprep.mubr.f32.mxu0 %v575_v12  ;;  %781 = vmatprep.subr.mxu1 %v3923_v6  ;;  %v2940_v14 = vand.u32 4294901760, %v2939_v11 }
  0x1c   :  { %667 = vmatmul.mubr.f32.vlgmr.msra.gmra.mxu1 %v3925_v9  ;;  %861 = vmatprep.subr.mxu0 %v576_v18  ;;  %v2476_v12 = vand.u32 4294901760, %v2475_v8 }
  0x1d   :  { %745 = vmatmul.mubr.f32.vlgmr.msra.gmra.mxu0 %v581_v15  ;;  %783 = vmatpush1.xpose.msra.mxu1 %v3925_v9  ;;  %v34_v15 = vld [vmem:[%s4100_s1 + $0x38] sm:$0xff]  ;;  %s3895_s1 = smov [#allocation4]  }
  0x1e   :  { %865 = vmatpush1.xpose.msra.mxu0 %v582_v20  ;;  %819 = vmatprep.mubr.f32.mxu1 %v576_v18  ;;  %v2941_v18 = vsub.f32 %v2939_v11, %v2940_v14  ;;  %v4047_v19 = vand.u32 4294901760, %v34_v15  ;;  %s3858_s12 = sshll.u32 %s3895_s1, 4  ;;  %s3859_s12 = int_to_ptr.vmem [resolvable:$true] %s3858_s12 }
  0x1f   :  { %899 = vmatprep.mubr.f32.mxu0 %v3923_v6  ;;  %937 = vmatprep.subr.mxu1 %v3923_v6  ;;  %s3872_s13 = scalar_lea.vmem %s3859_s12, 16  ;;  %s3876_s14 = scalar_lea.vmem %s3859_s12, 32 }
  0x20   :  { %823 = vmatmul.mubr.f32.vlgmr.msra.gmra.mxu1 %v582_v20  ;;  %1011 = vmatprep.subr.mxu0 %v3935_v23  ;;  %v2942_v22 = vand.u32 4294901760, %v2941_v18  ;;  %p3873_p0 = scmp.ne.s32.totalorder %s3859_s12, %s3872_s13  ;;  %p3877_p1 = scmp.lt.s32.totalorder %s3859_s12, %s3859_s12 }
  0x21   :  { %901 = vmatmul.mubr.f32.vlgmr.msra.gmra.mxu0 %v3925_v9  ;;  %939 = vmatpush1.xpose.msra.mxu1 %v3925_v9  ;;  %p3878_p2 = scmp.lt.s32.totalorder %s3876_s14, %s3872_s13 }
  0x22   :  { %1013 = vmatpush1.xpose.msra.mxu0 %v3937_v25  ;;  %973 = vmatprep.mubr.f32.mxu1 %v3923_v6  ;;  %v2469_v6 = vsub.f32 %v2467_v63, %v2468_v2 }
  0x23   :  { %1051 = vmatprep.mubr.f32.mxu0 %v1050_v38  ;;  %1097 = vmatprep.subr.mxu1 %v1050_v38  ;;  %p3879_p3 = por %p3878_p2, %p3877_p1 }
  0x24   :  { %975 = vmatmul.mubr.f32.vlgmr.msra.gmra.mxu1 %v3925_v9  ;;  %1176 = vmatprep.subr.mxu0 %v1047_v27  ;;  %v4027_v9 = vand.u32 4294901760, %v31_v5  ;;  %v2470_v10 = vand.u32 4294901760, %v2469_v6 }
  0x25   :  { %1057 = vmatmul.mubr.f32.vlgmr.msra.gmra.mxu0 %v1056_v40  ;;  %1103 = vmatpush1.xpose.msra.mxu1 %v1056_v40  ;;  %p3880_p4 = pnand %p3879_p3, %p3873_p0 }
  0x26   :  { %1179 = vmatpush1.xpose.msra.mxu0 %v1053_v29  ;;  %1137 = vmatprep.mubr.f32.mxu1 %v3935_v23  ;;  %v2945_v13 = vsub.f32 %v31_v5, %v4027_v9 }
  0x27   :  { %1214 = vmatprep.mubr.f32.mxu0 %v1047_v27  ;;  %1253 = vmatprep.subr.mxu1 %v3935_v23 }
  0x28   :  { %1139 = vmatmul.mubr.f32.vlgmr.msra.gmra.mxu1 %v3937_v25  ;;  %1333 = vmatprep.subr.mxu0 %v1048_v30  ;;  %v2946_v16 = vand.u32 4294901760, %v2945_v13 }
  0x29   :  { %1217 = vmatmul.mubr.f32.vlgmr.msra.gmra.mxu0 %v1053_v29  ;;  %1255 = vmatpush1.xpose.msra.mxu1 %v3937_v25 }
  0x2a   :  { %1337 = vmatpush1.xpose.msra.mxu0 %v1054_v32  ;;  %1291 = vmatprep.mubr.f32.mxu1 %v1048_v30  ;;  %v2947_v20 = vsub.f32 %v2945_v13, %v2946_v16 }
  0x2b   :  { %1371 = vmatprep.mubr.f32.mxu0 %v3935_v23  ;;  %1409 = vmatprep.subr.mxu1 %v3935_v23 }
  0x2c   :  { %1295 = vmatmul.mubr.f32.vlgmr.msra.gmra.mxu1 %v1054_v32  ;;  %1483 = vmatprep.subr.mxu0 %v3951_v35  ;;  %v2948_v24 = vand.u32 4294901760, %v2947_v20  ;;  %v3894_v32 = vmov 0.0  }
  0x2d   :  { %1373 = vmatmul.mubr.f32.vlgmr.msra.gmra.mxu0 %v3937_v25  ;;  %1411 = vmatpush1.xpose.msra.mxu1 %v3937_v25  ;;  %17 = vst.msk [vmem:[#allocation2] sm:$0xff] %vm16_vm0, %v3894_v32  ;;  %18 = vst.msk [vmem:[#allocation3] sm:$0xff] %vm16_vm0, %v3894_v32 }
  0x2e   :  { %1485 = vmatpush1.xpose.msra.mxu0 %v3955_v37  ;;  %1445 = vmatprep.mubr.f32.mxu1 %v3935_v23  ;;  %v3411_v23 = vsub.f32 %v34_v15, %v4047_v19 }
  0x2f   :  { %1523 = vmatprep.mubr.f32.mxu0 %v1522_v50  ;;  %1569 = vmatprep.subr.mxu1 %v1522_v50 }
  0x30   :  { %1447 = vmatmul.mubr.f32.vlgmr.msra.gmra.mxu1 %v3937_v25  ;;  %1648 = vmatprep.subr.mxu0 %v1519_v39  ;;  %v3417_v25 = vsub.f32 %v33_v17, %v4051_v21  ;;  %v3412_v26 = vand.u32 4294901760, %v3411_v23 }
  0x31   :  { %1529 = vmatmul.mubr.f32.vlgmr.msra.gmra.mxu0 %v1528_v52  ;;  %1575 = vmatpush1.xpose.msra.mxu1 %v1528_v52 }
  0x32   :  { %1651 = vmatpush1.xpose.msra.mxu0 %v1525_v41  ;;  %1609 = vmatprep.mubr.f32.mxu1 %v3951_v35  ;;  %v3418_v27 = vand.u32 4294901760, %v3417_v25  ;;  %v3413_v28 = vsub.f32 %v3411_v23, %v3412_v26 }
  0x33   :  { %1686 = vmatprep.mubr.f32.mxu0 %v1519_v39  ;;  %1725 = vmatprep.subr.mxu1 %v3951_v35 }
  0x34   :  { %1611 = vmatmul.mubr.f32.vlgmr.msra.gmra.mxu1 %v3955_v37  ;;  %1805 = vmatprep.subr.mxu0 %v1520_v42  ;;  %v3419_v29 = vsub.f32 %v3417_v25, %v3418_v27  ;;  %v3414_v30 = vand.u32 4294901760, %v3413_v28 }
  0x35   :  { %1689 = vmatmul.mubr.f32.vlgmr.msra.gmra.mxu0 %v1525_v41  ;;  %1727 = vmatpush1.xpose.msra.mxu1 %v3955_v37 }
  0x36   :  { %1809 = vmatpush1.xpose.msra.mxu0 %v1526_v44  ;;  %1763 = vmatprep.mubr.f32.mxu1 %v1520_v42  ;;  %v3420_v31 = vand.u32 4294901760, %v3419_v29 }
  0x37   :  { %1843 = vmatprep.mubr.f32.mxu0 %v3951_v35  ;;  %1881 = vmatprep.subr.mxu1 %v3951_v35 }
  0x38   :  { %1767 = vmatmul.mubr.f32.vlgmr.msra.gmra.mxu1 %v1526_v44  ;;  %1959 = vmatprep.subr.mxu0 %v3975_v47 }
  0x39   :  { %1845 = vmatmul.mubr.f32.vlgmr.msra.gmra.mxu0 %v3955_v37  ;;  %1883 = vmatpush1.xpose.msra.mxu1 %v3955_v37 }
  0x3a   :  { %1961 = vmatpush1.xpose.msra.mxu0 %v3979_v49  ;;  %1917 = vmatprep.mubr.f32.mxu1 %v3951_v35 }
  0x3b   :  { %1999 = vmatprep.mubr.f32.mxu0 %v1998_v62  ;;  %2045 = vmatprep.subr.mxu1 %v1998_v62 }
  0x3c   :  { %1919 = vmatmul.mubr.f32.vlgmr.msra.gmra.mxu1 %v3955_v37  ;;  %2124 = vmatprep.subr.mxu0 %v1995_v51 }
  0x3d   :  { %2005 = vmatmul.mubr.f32.vlgmr.msra.gmra.mxu0 %v2004_v0  ;;  %2051 = vmatpush1.xpose.msra.mxu1 %v2004_v0 }
  0x3e   :  { %2127 = vmatpush1.xpose.msra.mxu0 %v2001_v53  ;;  %2085 = vmatprep.mubr.f32.mxu1 %v3975_v47 }
  0x3f   :  { %2162 = vmatprep.mubr.f32.mxu0 %v1995_v51  ;;  %2201 = vmatprep.subr.mxu1 %v3975_v47 }
  0x40   :  { %2087 = vmatmul.mubr.f32.vlgmr.msra.gmra.mxu1 %v3979_v49  ;;  %2281 = vmatprep.subr.mxu0 %v1996_v54 }
  0x41   :  { %2165 = vmatmul.mubr.f32.vlgmr.msra.gmra.mxu0 %v2001_v53  ;;  %2203 = vmatpush1.xpose.msra.mxu1 %v3979_v49 }
  0x42   :  { %2285 = vmatpush1.xpose.msra.mxu0 %v2002_v56  ;;  %2239 = vmatprep.mubr.f32.mxu1 %v1996_v54 }
  0x43   :  { %2319 = vmatprep.mubr.f32.mxu0 %v3975_v47  ;;  %2357 = vmatprep.subr.mxu1 %v3975_v47 }
  0x44   :  { %2243 = vmatmul.mubr.f32.vlgmr.msra.gmra.mxu1 %v2002_v56  ;;  %2431 = vmatprep.subr.mxu0 %v3999_v59 }
  0x45   :  { %2321 = vmatmul.mubr.f32.vlgmr.msra.gmra.mxu0 %v3979_v49  ;;  %2359 = vmatpush1.xpose.msra.mxu1 %v3979_v49 }
  0x46   :  { %2433 = vmatpush1.xpose.msra.mxu0 %v4003_v61  ;;  %2393 = vmatprep.mubr.f32.mxu1 %v3975_v47 }
  0x47   :  { %2471 = vmatprep.mubr.f32.mxu0 %v2470_v10  ;;  %2517 = vmatprep.subr.mxu1 %v2470_v10 }
  0x48   :  { %2395 = vmatmul.mubr.f32.vlgmr.msra.gmra.mxu1 %v3979_v49  ;;  %2596 = vmatprep.subr.mxu0 %v2467_v63 }
  0x49   :  { %2477 = vmatmul.mubr.f32.vlgmr.msra.gmra.mxu0 %v2476_v12  ;;  %2523 = vmatpush1.xpose.msra.mxu1 %v2476_v12 }
  0x4a   :  { %2599 = vmatpush1.xpose.msra.mxu0 %v2473_v1  ;;  %2557 = vmatprep.mubr.f32.mxu1 %v3999_v59 }
  0x4b   :  { %2634 = vmatprep.mubr.f32.mxu0 %v2467_v63  ;;  %2673 = vmatprep.subr.mxu1 %v3999_v59 }
  0x4c   :  { %2559 = vmatmul.mubr.f32.vlgmr.msra.gmra.mxu1 %v4003_v61  ;;  %2753 = vmatprep.subr.mxu0 %v2468_v2 }
  0x4d   :  { %2637 = vmatmul.mubr.f32.vlgmr.msra.gmra.mxu0 %v2473_v1  ;;  %2675 = vmatpush1.xpose.msra.mxu1 %v4003_v61 }
  0x4e   :  { %2757 = vmatpush1.xpose.msra.mxu0 %v2474_v4  ;;  %2711 = vmatprep.mubr.f32.mxu1 %v2468_v2 }
  0x4f   :  { %2791 = vmatprep.mubr.f32.mxu0 %v3999_v59  ;;  %2829 = vmatprep.subr.mxu1 %v3999_v59 }
  0x50   :  { %2715 = vmatmul.mubr.f32.vlgmr.msra.gmra.mxu1 %v2474_v4  ;;  %2903 = vmatprep.subr.mxu0 %v4023_v7 }
  0x51   :  { %2793 = vmatmul.mubr.f32.vlgmr.msra.gmra.mxu0 %v4003_v61  ;;  %2831 = vmatpush1.xpose.msra.mxu1 %v4003_v61 }
  0x52   :  { %2905 = vmatpush1.xpose.msra.mxu0 %v4027_v9  ;;  %2865 = vmatprep.mubr.f32.mxu1 %v3999_v59 }
  0x53   :  { %2943 = vmatprep.mubr.f32.mxu0 %v2942_v22  ;;  %2989 = vmatprep.subr.mxu1 %v2942_v22 }
  0x54   :  { %2867 = vmatmul.mubr.f32.vlgmr.msra.gmra.mxu1 %v4003_v61  ;;  %3068 = vmatprep.subr.mxu0 %v2939_v11 }
  0x55   :  { %2949 = vmatmul.mubr.f32.vlgmr.msra.gmra.mxu0 %v2948_v24  ;;  %2995 = vmatpush1.xpose.msra.mxu1 %v2948_v24 }
  0x56   :  { %3071 = vmatpush1.xpose.msra.mxu0 %v2945_v13  ;;  %3029 = vmatprep.mubr.f32.mxu1 %v4023_v7 }
  0x57   :  { %3106 = vmatprep.mubr.f32.mxu0 %v2939_v11  ;;  %3145 = vmatprep.subr.mxu1 %v4023_v7 }
  0x58   :  { %3031 = vmatmul.mubr.f32.vlgmr.msra.gmra.mxu1 %v4027_v9  ;;  %3225 = vmatprep.subr.mxu0 %v2940_v14 }
  0x59   :  { %3109 = vmatmul.mubr.f32.vlgmr.msra.gmra.mxu0 %v2945_v13  ;;  %3147 = vmatpush1.xpose.msra.mxu1 %v4027_v9 }
  0x5a   :  { %3229 = vmatpush1.xpose.msra.mxu0 %v2946_v16  ;;  %3183 = vmatprep.mubr.f32.mxu1 %v2940_v14 }
  0x5b   :  { %3263 = vmatprep.mubr.f32.mxu0 %v4023_v7  ;;  %3301 = vmatprep.subr.mxu1 %v4023_v7 }
  0x5c   :  { %3187 = vmatmul.mubr.f32.vlgmr.msra.gmra.mxu1 %v2946_v16  ;;  %3375 = vmatprep.subr.mxu0 %v4047_v19 }
  0x5d   :  { %3265 = vmatmul.mubr.f32.vlgmr.msra.gmra.mxu0 %v4027_v9  ;;  %3303 = vmatpush1.xpose.msra.mxu1 %v4027_v9 }
  0x5e   :  { %3377 = vmatpush1.xpose.msra.mxu0 %v4051_v21  ;;  %3337 = vmatprep.mubr.f32.mxu1 %v4023_v7 }
  0x5f   :  { %3415 = vmatprep.mubr.f32.mxu0 %v3414_v30  ;;  %3461 = vmatprep.subr.mxu1 %v3414_v30 }
  0x60   :  { %3339 = vmatmul.mubr.f32.vlgmr.msra.gmra.mxu1 %v4027_v9  ;;  %3540 = vmatprep.subr.mxu0 %v3411_v23 }
  0x61   :  { %3421 = vmatmul.mubr.f32.vlgmr.msra.gmra.mxu0 %v3420_v31  ;;  %3467 = vmatpush1.xpose.msra.mxu1 %v3420_v31 }
  0x62   :  { %3543 = vmatpush1.xpose.msra.mxu0 %v3417_v25  ;;  %3501 = vmatprep.mubr.f32.mxu1 %v4047_v19 }
  0x63   :  { %3578 = vmatprep.mubr.f32.mxu0 %v3411_v23  ;;  %3617 = vmatprep.subr.mxu1 %v4047_v19 }
  0x64   :  { %3503 = vmatmul.mubr.f32.vlgmr.msra.gmra.mxu1 %v4051_v21  ;;  %3697 = vmatprep.subr.mxu0 %v3412_v26 }
  0x65   :  { %3581 = vmatmul.mubr.f32.vlgmr.msra.gmra.mxu0 %v3417_v25  ;;  %3619 = vmatpush1.xpose.msra.mxu1 %v4051_v21 }
  0x66   :  { %3701 = vmatpush1.xpose.msra.mxu0 %v3418_v27  ;;  %3655 = vmatprep.mubr.f32.mxu1 %v3412_v26 }
  0x67   :  { %3735 = vmatprep.mubr.f32.mxu0 %v4047_v19  ;;  %3773 = vmatprep.subr.mxu1 %v4047_v19 }
  0x68   :  { %3659 = vmatmul.mubr.f32.vlgmr.msra.gmra.mxu1 %v3418_v27 }
  0x69   :  { %3737 = vmatmul.mubr.f32.vlgmr.msra.gmra.mxu0 %v4051_v21  ;;  %3775 = vmatpush1.xpose.msra.mxu1 %v4051_v21 }
  0x6a   :  { %3809 = vmatprep.mubr.f32.mxu1 %v4047_v19 }
  0x6c   :  { %3811 = vmatmul.mubr.f32.vlgmr.msra.gmra.mxu1 %v4051_v21 }
  0xcd   :  { %v114_v33 = vpop.f32.mrf.mxu0 }
  0xcf   :  { %v116_v34 = vpop.f32.mrf.mxu0 }
  0xd0   :  { %v196_v35 = vpop.f32.mrf.mxu1 }
  0xd1   :  { %v197_v36 = vadd.f32 %v196_v35, %v114_v33  ;;  %v274_v37 = vpop.f32.mrf.mxu0 }
  0xd2   :  { %v198_v38 = vpop.f32.mrf.mxu1 }
  0xd3   :  { %v275_v39 = vadd.f32 %v274_v37, %v197_v36  ;;  %v276_v40 = vpop.f32.mrf.mxu0  ;;  %v35_v37 = vld [vmem:[#allocation2] sm:$0xff] }
  0xd4   :  { %v352_v41 = vpop.f32.mrf.mxu1 }
  0xd5   :  { %v353_v42 = vadd.f32 %v352_v41, %v275_v39  ;;  %v430_v43 = vpop.f32.mrf.mxu0 }
  0xd6   :  { %v354_v44 = vpop.f32.mrf.mxu1 }
  0xd7   :  { %v431_v45 = vadd.f32 %v430_v43, %v353_v42  ;;  %v432_v46 = vpop.f32.mrf.mxu0 }
  0xd8   :  { %v504_v47 = vpop.f32.mrf.mxu1 }
  0xd9   :  { %v505_v48 = vadd.f32 %v504_v47, %v431_v45  ;;  %v586_v49 = vpop.f32.mrf.mxu0 }
  0xda   :  { %v506_v50 = vpop.f32.mrf.mxu1 }
  0xdb   :  { %v587_v51 = vadd.f32 %v586_v49, %v505_v48  ;;  %v588_v52 = vpop.f32.mrf.mxu0 }
  0xdc   :  { %v668_v53 = vpop.f32.mrf.mxu1 }
  0xdd   :  { %v669_v54 = vadd.f32 %v668_v53, %v587_v51  ;;  %v746_v55 = vpop.f32.mrf.mxu0 }
  0xde   :  { %v670_v56 = vpop.f32.mrf.mxu1 }
  0xdf   :  { %v747_v57 = vadd.f32 %v746_v55, %v669_v54  ;;  %v748_v58 = vpop.f32.mrf.mxu0 }
  0xe0   :  { %v824_v59 = vpop.f32.mrf.mxu1 }
  0xe1   :  { %v825_v60 = vadd.f32 %v824_v59, %v747_v57  ;;  %v902_v61 = vpop.f32.mrf.mxu0 }
  0xe2   :  { %v826_v62 = vpop.f32.mrf.mxu1 }
  0xe3   :  { %v903_v63 = vadd.f32 %v902_v61, %v825_v60  ;;  %v904_v0 = vpop.f32.mrf.mxu0 }
  0xe4   :  { %v976_v1 = vpop.f32.mrf.mxu1 }
  0xe5   :  { %v977_v2 = vadd.f32 %v976_v1, %v903_v63  ;;  %v1058_v3 = vpop.f32.mrf.mxu0 }
  0xe6   :  { %v978_v4 = vpop.f32.mrf.mxu1 }
  0xe7   :  { %v1059_v5 = vadd.f32 %v1058_v3, %v977_v2  ;;  %v1060_v6 = vpop.f32.mrf.mxu0 }
  0xe8   :  { %v1140_v7 = vpop.f32.mrf.mxu1 }
  0xe9   :  { %v1141_v8 = vadd.f32 %v1140_v7, %v1059_v5  ;;  %v1218_v9 = vpop.f32.mrf.mxu0 }
  0xea   :  { %v1142_v10 = vpop.f32.mrf.mxu1 }
  0xeb   :  { %v1219_v11 = vadd.f32 %v1218_v9, %v1141_v8  ;;  %v1220_v12 = vpop.f32.mrf.mxu0 }
  0xec   :  { %v1296_v13 = vpop.f32.mrf.mxu1 }
  0xed   :  { %v1297_v14 = vadd.f32 %v1296_v13, %v1219_v11  ;;  %v1374_v15 = vpop.f32.mrf.mxu0 }
  0xee   :  { %v1298_v16 = vpop.f32.mrf.mxu1 }
  0xef   :  { %v1375_v17 = vadd.f32 %v1374_v15, %v1297_v14  ;;  %v1376_v18 = vpop.f32.mrf.mxu0 }
  0xf0   :  { %v1448_v19 = vpop.f32.mrf.mxu1 }
  0xf1   :  { %v1449_v20 = vadd.f32 %v1448_v19, %v1375_v17  ;;  %v1530_v21 = vpop.f32.mrf.mxu0 }
  0xf2   :  { %v1450_v22 = vpop.f32.mrf.mxu1 }
  0xf3   :  { %v1531_v23 = vadd.f32 %v1530_v21, %v1449_v20  ;;  %v1532_v24 = vpop.f32.mrf.mxu0 }
  0xf4   :  { %v1612_v25 = vpop.f32.mrf.mxu1 }
  0xf5   :  { %v1613_v26 = vadd.f32 %v1612_v25, %v1531_v23  ;;  %v1690_v27 = vpop.f32.mrf.mxu0 }
  0xf6   :  { %v1614_v28 = vpop.f32.mrf.mxu1 }
  0xf7   :  { %v1691_v29 = vadd.f32 %v1690_v27, %v1613_v26  ;;  %v1692_v30 = vpop.f32.mrf.mxu0 }
  0xf8   :  { %v1768_v31 = vpop.f32.mrf.mxu1 }
  0xf9   :  { %v1769_v32 = vadd.f32 %v1768_v31, %v1691_v29  ;;  %v1846_v33 = vpop.f32.mrf.mxu0 }
  0xfa   :  { %v1770_v34 = vpop.f32.mrf.mxu1 }
  0xfb   :  { %v1847_v35 = vadd.f32 %v1846_v33, %v1769_v32  ;;  %v1848_v36 = vpop.f32.mrf.mxu0 }
  0xfc   :  { %v1920_v38 = vpop.f32.mrf.mxu1 }
  0xfd   :  { %v1921_v39 = vadd.f32 %v1920_v38, %v1847_v35  ;;  %v2006_v40 = vpop.f32.mrf.mxu0 }
  0xfe   :  { %v1922_v41 = vpop.f32.mrf.mxu1 }
  0xff   :  { %v1924_v42 = vadd.f32 %v1921_v39, %v35_v37  ;;  %v2008_v43 = vpop.f32.mrf.mxu0 }
 0x100   :  { %v2088_v44 = vpop.f32.mrf.mxu1 }
 0x101   :  { %1926 = vst.msk [vmem:[#allocation2] sm:$0xff] %vm16_vm0, %v1924_v42  ;;  %v2089_v45 = vadd.f32 %v2088_v44, %v2006_v40  ;;  %v2166_v46 = vpop.f32.mrf.mxu0 }
 0x102   :  { %v2090_v47 = vpop.f32.mrf.mxu1 }
 0x103   :  { %v2167_v48 = vadd.f32 %v2166_v46, %v2089_v45  ;;  %v2168_v49 = vpop.f32.mrf.mxu0 }
 0x104   :  { %v2244_v50 = vpop.f32.mrf.mxu1  ;;  %v1927_v49 = vld [vmem:[#allocation3] sm:$0xff] }
 0x105   :  { %v2245_v51 = vadd.f32 %v2244_v50, %v2167_v48  ;;  %v2322_v52 = vpop.f32.mrf.mxu0 }
 0x106   :  { %v2246_v53 = vpop.f32.mrf.mxu1 }
 0x107   :  { %v2323_v54 = vadd.f32 %v2322_v52, %v2245_v51  ;;  %v2324_v55 = vpop.f32.mrf.mxu0 }
 0x108   :  { %v2396_v56 = vpop.f32.mrf.mxu1  ;;  %v4088_v57 = vld [vmem:[#allocation2] sm:$0xff] }
 0x109   :  { %v2397_v58 = vadd.f32 %v2396_v56, %v2323_v54  ;;  %v2478_v59 = vpop.f32.mrf.mxu0  ;;  %v3823_v60 = vand.u32 2147483647, %v4088_v57 }
 0x10a   :  { %v2398_v61 = vpop.f32.mrf.mxu1 }
 0x10b   :  { %v2479_v62 = vadd.f32 %v2478_v59, %v2397_v58  ;;  %v2480_v63 = vpop.f32.mrf.mxu0  ;;  %v3824_v0 = vsel %vm16_vm0, %v3823_v60, 0.0 }
 0x10c   :  { %v2560_v1 = vpop.f32.mrf.mxu1  ;;  %3825 = vadd.xlane.f32.xlu0 %v3824_v0 }
 0x10d   :  { %v2561_v2 = vadd.f32 %v2560_v1, %v2479_v62  ;;  %v2638_v3 = vpop.f32.mrf.mxu0 }
 0x10e   :  { %v2562_v4 = vpop.f32.mrf.mxu1 }
 0x10f   :  { %v2639_v5 = vadd.f32 %v2638_v3, %v2561_v2  ;;  %v2640_v6 = vpop.f32.mrf.mxu0 }
 0x110   :  { %v2716_v7 = vpop.f32.mrf.mxu1 }
 0x111   :  { %v2717_v8 = vadd.f32 %v2716_v7, %v2639_v5  ;;  %v2794_v9 = vpop.f32.mrf.mxu0 }
 0x112   :  { %v2718_v10 = vpop.f32.mrf.mxu1 }
 0x113   :  { %v2795_v11 = vadd.f32 %v2794_v9, %v2717_v8  ;;  %v2796_v12 = vpop.f32.mrf.mxu0 }
 0x114   :  { %v2868_v13 = vpop.f32.mrf.mxu1 }
 0x115   :  { %v2869_v14 = vadd.f32 %v2868_v13, %v2795_v11  ;;  %v2950_v15 = vpop.f32.mrf.mxu0 }
 0x116   :  { %v2870_v16 = vpop.f32.mrf.mxu1 }
 0x117   :  { %v2951_v17 = vadd.f32 %v2950_v15, %v2869_v14  ;;  %v2952_v18 = vpop.f32.mrf.mxu0 }
 0x118   :  { %v3032_v19 = vpop.f32.mrf.mxu1 }
 0x119   :  { %v3033_v20 = vadd.f32 %v3032_v19, %v2951_v17  ;;  %v3110_v21 = vpop.f32.mrf.mxu0 }
 0x11a   :  { %v3034_v22 = vpop.f32.mrf.mxu1 }
 0x11b   :  { %v3111_v23 = vadd.f32 %v3110_v21, %v3033_v20  ;;  %v3112_v24 = vpop.f32.mrf.mxu0 }
 0x11c   :  { %v3188_v25 = vpop.f32.mrf.mxu1 }
 0x11d   :  { %v3189_v26 = vadd.f32 %v3188_v25, %v3111_v23  ;;  %v3266_v27 = vpop.f32.mrf.mxu0 }
 0x11e   :  { %v3190_v28 = vpop.f32.mrf.mxu1 }
 0x11f   :  { %v3267_v29 = vadd.f32 %v3266_v27, %v3189_v26  ;;  %v3268_v30 = vpop.f32.mrf.mxu0 }
 0x120   :  { %v3340_v31 = vpop.f32.mrf.mxu1 }
 0x121   :  { %v3341_v32 = vadd.f32 %v3340_v31, %v3267_v29  ;;  %v3422_v33 = vpop.f32.mrf.mxu0 }
 0x122   :  { %v3342_v34 = vpop.f32.mrf.mxu1 }
 0x123   :  { %v3423_v35 = vadd.f32 %v3422_v33, %v3341_v32  ;;  %v3424_v36 = vpop.f32.mrf.mxu0 }
 0x124   :  { %v3504_v37 = vpop.f32.mrf.mxu1 }
 0x125   :  { %v3505_v38 = vadd.f32 %v3504_v37, %v3423_v35  ;;  %v3582_v39 = vpop.f32.mrf.mxu0 }
 0x126   :  { %v3506_v40 = vpop.f32.mrf.mxu1 }
 0x127   :  { %v3583_v41 = vadd.f32 %v3582_v39, %v3505_v38  ;;  %v3584_v42 = vpop.f32.mrf.mxu0 }
 0x128   :  { %v3660_v43 = vpop.f32.mrf.mxu1 }
 0x129   :  { %v3661_v44 = vadd.f32 %v3660_v43, %v3583_v41  ;;  %v3738_v45 = vpop.f32.mrf.mxu0 }
 0x12a   :  { %v3662_v46 = vpop.f32.mrf.mxu1 }
 0x12b   :  { %v3739_v47 = vadd.f32 %v3738_v45, %v3661_v44  ;;  %v3740_v48 = vpop.f32.mrf.mxu0 }
 0x12c   :  { %v3812_v50 = vpop.f32.mrf.mxu1 }
 0x12d   :  { %v3813_v51 = vadd.f32 %v3812_v50, %v3739_v47 }
 0x12e   :  { %v3814_v52 = vpop.f32.mrf.mxu1 }
 0x12f   :  { %v3816_v53 = vadd.f32 %v3813_v51, %v1927_v49 }
 0x131   :  { %3817 = vst.msk [vmem:[#allocation3] sm:$0xff] %vm16_vm0, %v3816_v53 }
 0x138   :  { %v3822_v54 = vld [vmem:[#allocation3] sm:$0xff] }
 0x139   :  { %v3829_v55 = vand.u32 2147483647, %v3822_v54 }
 0x13b   :  { %v3830_v56 = vsel %vm16_vm0, %v3829_v55, 0.0 }
 0x13c   :  { %3831 = vadd.xlane.f32.xlu0 %v3830_v56 }
 0x195   :  { %v3826_v58 = vpop.xlane.xlu0 %3825 }
 0x196   :  { %v3827_v59 = vmax.f32 %v3826_v58, 1e-12 }
 0x198   :  { %3868 = vrcp.f32 %v3827_v59 }
 0x1a5   :  { %v3869_v62 = vpop.eup %3868 }
 0x1a6   :  { %v3835_v0 = vmul.f32 %v3869_v62, %v4088_v57 }
 0x1c5   :  { %v3832_v60 = vpop.xlane.xlu0 %3831 }
 0x1c6   :  { %v3833_v61 = vmax.f32 %v3832_v60, 1e-12 }
 0x1c8   :  { %3870 = vrcp.f32 %v3833_v61 }
 0x1d5   :  { %v3871_v63 = vpop.eup %3870 }
 0x1d6   :  { %v3836_v1 = vmul.f32 %v3871_v63, %v3822_v54 }
 0x1d8   :  { %v3837_v2 = vsub.f32 %v3835_v0, %v3836_v1 }
 0x1da   :  { %v3838_v3 = vmul.f32 %v3837_v2, %v3837_v2 }
 0x1dc   :  { %v3839_v4 = vsel %vm16_vm0, %v3838_v3, 0.0 }
 0x1dd   :  { %3840 = vadd.xlane.f32.xlu1 %v3839_v4 }
 0x266   :  { %v3841_v5 = vpop.xlane.xlu1 %3840 }
 0x267   :  { %v3842_v6 = vrot.slane %v3841_v5, 4 }
 0x269   :  { %v3843_v7 = vadd.f32 %v3842_v6, %v3841_v5 }
 0x26b   :  { %v3844_v8 = vrot.slane %v3843_v7, 2 }
 0x26d   :  { %v3845_v9 = vadd.f32 %v3844_v8, %v3843_v7 }
 0x26f   :  { %v3846_v10 = vrot.slane %v3845_v9, 1 }
 0x271   :  { %v3847_v11 = vadd.f32 %v3846_v10, %v3845_v9 }
 0x273   :  { %v3849_v12 = vmul.f32 0.25, %v3847_v11 }
 0x275   :  { %3851 = vst.msk [vmem:[#allocation4] sm:$0x1] %vm3850_vm1, %v3849_v12 }
 0x276   :  { %3883 = shalt.err (!%p3880_p4)
}
 0x277   :  { %3861 = dma.vmem_to_hbm [thread:$0]  %s3859_s12, 16, %s4101_s2, [#allocation5]  }
 0x278   :  { %3892 = dma.done.wait [#allocation5], 16  }
 0x279   :  { %3893 = vsyncadd [#allocation5], 4294967280 }
 0x27a   :  { %3865 = vsyncpa [#allocation5], 1 }

</bundles_post_ra>
